<compile_context>
chip_gen: v7x
topology: tpu7x:2x2x1
jax: 0.10.0
libtpu: 0.0.40
codegen_flags: <defaults>
</compile_context>

<pallas_src>
import functools

import jax
import jax.numpy as jnp
from jax.experimental import pallas as pl
from jax.experimental.pallas import tpu as pltpu

_LANE = 128
_SUBLANE = 8
_MAX_BLOCK_ROWS = 4096                 # (4096, 128) f32 = 2 MiB per input buffer
_VMEM_LIMIT_BYTES = 48 * 1024 * 1024   # explicit headroom; fits every generation


def _round_up(x, m):
    return ((x + m - 1) // m) * m


def _tree_sum(terms):
    """Balanced-tree add to keep the VPU dependency chain short."""
    while len(terms) > 1:
        nxt = [terms[i] + terms[i + 1] for i in range(0, len(terms) - 1, 2)]
        if len(terms) % 2:
            nxt.append(terms[-1])
        terms = nxt
    return terms[0]


def _weighted_sq(p, a, thresholds, weight_interval):
    """Elementwise (p - a)^2 * piecewise-constant-weight(a), f32 math."""
    p = p.astype(jnp.float32)
    a = a.astype(jnp.float32)
    d = p - a
    d2 = d * d
    w0 = jnp.float32(weight_interval[0])
    terms = [
        jnp.where(a >= jnp.float32(thr),
                  jnp.float32(weight_interval[i + 1] - weight_interval[i]),
                  jnp.float32(0.0))
        for i, thr in enumerate(thresholds)
    ]
    if terms:
        w = _tree_sum(terms) + w0
    else:
        w = jnp.full(a.shape, w0, jnp.float32)
    return d2 * w


def _make_kernel(thresholds, weight_interval, valid_rows_last, needs_mask):
    thresholds = tuple(float(t) for t in thresholds)
    weight_interval = tuple(float(w) for w in weight_interval)

    def _partial_sum(val):
        # (block_rows, 128) -> (8, 128): pure VPU adds, no cross-lane work,
        # result stays register-resident until the single output-block store.
        return val.reshape(-1, _SUBLANE, _LANE).sum(axis=0)

    def kernel(p_ref, a_ref, o_ref):
        val = _weighted_sq(p_ref[...], a_ref[...], thresholds, weight_interval)

        if needs_mask:
            last = pl.num_programs(0) - 1

            @pl.when(pl.program_id(0) != last)
            def _full():
                o_ref[...] = _partial_sum(val)

            @pl.when(pl.program_id(0) == last)
            def _masked():
                # Only the last block is partial: kill its OOB rows (block
                # padding is undefined data) with a single row compare.
                rows_iota = jax.lax.broadcasted_iota(jnp.int32, val.shape, 0)
                masked = jnp.where(rows_iota < valid_rows_last, val,
                                   jnp.float32(0.0))
                o_ref[...] = _partial_sum(masked)
        else:
            o_ref[...] = _partial_sum(val)

    return kernel


@functools.partial(jax.jit, static_argnames=("thresholds", "weight_interval"))
def weight_loss(prediction, actual, thresholds, weight_interval):
    """mean((prediction - actual)^2 * weights) with threshold-based weights."""
    assert len(weight_interval) == len(thresholds) + 1
    n = prediction.size
    p = prediction.reshape(-1)
    a = actual.reshape(-1)

    n_main = (n // _LANE) * _LANE    # 128-aligned prefix handled by the kernel
    tail = n - n_main                # <128 ragged remainder handled in jnp

    total = jnp.float32(0.0)
    if n_main:
        rows = n_main // _LANE
        p2 = (p if tail == 0 else p[:n_main]).reshape(rows, _LANE)
        a2 = (a if tail == 0 else a[:n_main]).reshape(rows, _LANE)

        # Largest sensible block (multiple of 16 so bf16 inputs stay
        # sublane-aligned), capped for small tensors.
        block_rows = min(_MAX_BLOCK_ROWS, _round_up(rows, 16))
        num_blocks = pl.cdiv(rows, block_rows)
        needs_mask = (rows % block_rows) != 0
        valid_rows_last = rows - (num_blocks - 1) * block_rows

        # TODO(synk): on v7x a bigger block (8192 rows) plus
        # pipeline_mode=pl.Buffered(3) on the input specs can shave the
        # remaining per-step overhead; kept generation-agnostic here.
        partials = pl.pallas_call(
            _make_kernel(thresholds, weight_interval, valid_rows_last,
                         needs_mask),
            out_shape=jax.ShapeDtypeStruct((num_blocks, _SUBLANE, _LANE),
                                           jnp.float32),
            grid=(num_blocks,),
            in_specs=[
                pl.BlockSpec((block_rows, _LANE), lambda i: (i, 0)),
                pl.BlockSpec((block_rows, _LANE), lambda i: (i, 0)),
            ],
            # One (8, 128) partial per grid step -> every output block is
            # written exactly once, so the axis is truly parallel and
            # multi-TensorCore chips shard the stream across cores.
            out_specs=pl.BlockSpec((None, _SUBLANE, _LANE),
                                   lambda i: (i, 0, 0)),
            compiler_params=pltpu.CompilerParams(
                dimension_semantics=("parallel",),
                vmem_limit_bytes=_VMEM_LIMIT_BYTES,
            ),
        )(p2, a2)
        total = jnp.sum(partials)

    if tail:
        # O(128) work; avoids an O(n) pad/copy of both inputs.
        total = total + jnp.sum(
            _weighted_sq(p[n_main:], a[n_main:], thresholds, weight_interval))

    # 1/n scale: fuses into the tiny partial-sum combine above.
    return total / jnp.float32(n)


def _reference(prediction, actual, thresholds, weight_interval):
    """Pure-JAX mirror of the PyTorch forward."""
    p = prediction.astype(jnp.float32)
    a = actual.astype(jnp.float32)
    w = jnp.ones_like(a) * weight_interval[0]
    for i, thr in enumerate(thresholds):
        w = w + (weight_interval[i + 1] - weight_interval[i]) * (
            a >= thr).astype(jnp.float32)
    return jnp.mean((p - a) ** 2 * w)


if __name__ == "__main__":
    key = jax.random.PRNGKey(0)
    k1, k2 = jax.random.split(key)
    prediction = jax.random.uniform(k1, (2, 4, 16, 16), jnp.float32)
    actual = jax.random.uniform(k2, (2, 4, 16, 16), jnp.float32)

    thresholds = (0.25, 0.5, 0.75)
    weight_interval = (1.0, 2.0, 5.0, 10.0)

    loss = weight_loss(prediction, actual, thresholds, weight_interval)
    loss = jax.block_until_ready(loss)

    ref = jax.block_until_ready(
        _reference(prediction, actual, thresholds, weight_interval))
    assert jnp.allclose(loss, ref, rtol=1e-5, atol=1e-6), (loss, ref)

    print("KERNEL_OK")
</pallas_src>

<mosaic_0001>
module attributes {stable_mosaic.version = 11 : i64} {
  func.func @kernel(%arg0: i32, %arg1: memref<16x128xf32, #tpu.memory_space<vmem>>, %arg2: memref<16x128xf32, #tpu.memory_space<vmem>>, %arg3: memref<1x8x128xf32, #tpu.memory_space<vmem>>) attributes {dimension_semantics = [#tpu.dimension_semantics<parallel>], iteration_bounds = array<i64: 1>, scalar_prefetch = 0 : i64, scratch_operands = 0 : i64, tpu.core_type = #tpu.core_type<tc>, window_params = [{transform_indices = @transform_0, window_bounds = array<i64: 16, 128>}, {transform_indices = @transform_1, window_bounds = array<i64: 16, 128>}, {transform_indices = @transform_2, window_bounds = array<i64: 1, 8, 128>}]} {
    %c0 = arith.constant 0 : index
    %c0_0 = arith.constant 0 : index
    %0 = vector.load %arg1[%c0, %c0_0] : memref<16x128xf32, #tpu.memory_space<vmem>>, vector<16x128xf32>
    %c0_1 = arith.constant 0 : index
    %c0_2 = arith.constant 0 : index
    %1 = vector.load %arg2[%c0_1, %c0_2] : memref<16x128xf32, #tpu.memory_space<vmem>>, vector<16x128xf32>
    %2 = arith.subf %0, %1 : vector<16x128xf32>
    %3 = arith.mulf %2, %2 : vector<16x128xf32>
    %cst = arith.constant 2.500000e-01 : f32
    %4 = vector.broadcast %cst : f32 to vector<16x128xf32>
    %5 = arith.cmpf oge, %1, %4 : vector<16x128xf32>
    %cst_3 = arith.constant 1.000000e+00 : f32
    %cst_4 = arith.constant 0.000000e+00 : f32
    %6 = vector.broadcast %cst_3 : f32 to vector<16x128xf32>
    %7 = vector.broadcast %cst_4 : f32 to vector<16x128xf32>
    %8 = arith.select %5, %6, %7 : vector<16x128xi1>, vector<16x128xf32>
    %cst_5 = arith.constant 5.000000e-01 : f32
    %9 = vector.broadcast %cst_5 : f32 to vector<16x128xf32>
    %10 = arith.cmpf oge, %1, %9 : vector<16x128xf32>
    %cst_6 = arith.constant 3.000000e+00 : f32
    %cst_7 = arith.constant 0.000000e+00 : f32
    %11 = vector.broadcast %cst_6 : f32 to vector<16x128xf32>
    %12 = vector.broadcast %cst_7 : f32 to vector<16x128xf32>
    %13 = arith.select %10, %11, %12 : vector<16x128xi1>, vector<16x128xf32>
    %cst_8 = arith.constant 7.500000e-01 : f32
    %14 = vector.broadcast %cst_8 : f32 to vector<16x128xf32>
    %15 = arith.cmpf oge, %1, %14 : vector<16x128xf32>
    %cst_9 = arith.constant 5.000000e+00 : f32
    %cst_10 = arith.constant 0.000000e+00 : f32
    %16 = vector.broadcast %cst_9 : f32 to vector<16x128xf32>
    %17 = vector.broadcast %cst_10 : f32 to vector<16x128xf32>
    %18 = arith.select %15, %16, %17 : vector<16x128xi1>, vector<16x128xf32>
    %19 = arith.addf %8, %13 : vector<16x128xf32>
    %20 = arith.addf %19, %18 : vector<16x128xf32>
    %cst_11 = arith.constant 1.000000e+00 : f32
    %21 = vector.broadcast %cst_11 : f32 to vector<16x128xf32>
    %22 = arith.addf %20, %21 : vector<16x128xf32>
    %23 = arith.mulf %3, %22 : vector<16x128xf32>
    %24 = vector.shape_cast %23 : vector<16x128xf32> to vector<2x8x128xf32>
    %cst_12 = arith.constant dense<0.000000e+00> : vector<8x128xf32>
    %25 = vector.multi_reduction <add>, %24, %cst_12 [0] : vector<2x8x128xf32> to vector<8x128xf32>
    %c0_13 = arith.constant 0 : index
    %c0_14 = arith.constant 0 : index
    %c0_15 = arith.constant 0 : index
    %26 = vector.load %arg3[%c0_13, %c0_14, %c0_15] : memref<1x8x128xf32, #tpu.memory_space<vmem>>, vector<1x8x128xf32>
    %27 = vector.shape_cast %26 : vector<1x8x128xf32> to vector<8x128xf32>
    %28 = vector.shape_cast %25 : vector<8x128xf32> to vector<1x8x128xf32>
    tpu.vector_store %arg3[%c0_13, %c0_14, %c0_15], %28 {strides = array<i32>} : memref<1x8x128xf32, #tpu.memory_space<vmem>>, vector<1x8x128xf32>,
    return
  }
  func.func @transform_0(%arg0: i32) -> (i32, i32) {
    %c0_i32 = arith.constant 0 : i32
    %c0_i32_0 = arith.constant 0 : i32
    return %arg0, %c0_i32 : i32, i32
  }
  func.func @transform_1(%arg0: i32) -> (i32, i32) {
    %c0_i32 = arith.constant 0 : i32
    %c0_i32_0 = arith.constant 0 : i32
    return %arg0, %c0_i32 : i32, i32
  }
  func.func @transform_2(%arg0: i32) -> (i32, i32, i32) {
    %c0_i32 = arith.constant 0 : i32
    %c0_i32_0 = arith.constant 0 : i32
    %c0_i32_1 = arith.constant 0 : i32
    return %arg0, %c0_i32, %c0_i32_0 : i32, i32, i32
  }
}

</mosaic_0001>

<bundles_post_ra>
// kernel: weight_loss.1
= control target key start
LH: loop header
LB: loop body
LE: loop exit
PB: predicated region body
PF: predicated region fallthrough
CT: control target
= control target key end

     0   :  { %v46_v5 = vmov 0.0   ;;  %s77_s0 = inlined_call_operand.vmem [shape: f32[16,128], index: 0, kind: input, shape index: {}]   ;;  %s78_s1 = inlined_call_operand.vmem [shape: f32[16,128], index: 1, kind: input, shape index: {}]   ;;  %s79_s2 = inlined_call_operand.vmem [shape: f32[1,8,128], index: 2, kind: output, shape index: {}]  }
   0x1   :  { %v11_v0 = vld [vmem:[%s77_s0] sm:$0xff]  ;;  %v12_v1 = vld [vmem:[%s77_s0 + $0x8] sm:$0xff] }
   0x2   :  { %v13_v2 = vld [vmem:[%s78_s1] sm:$0xff]  ;;  %v14_v3 = vld [vmem:[%s78_s1 + $0x8] sm:$0xff] }
   0x3   :  { %vm19_vm0 = vcmp.ge.f32.partialorder %v13_v2, 0.25  ;;  %vm23_vm1 = vcmp.ge.f32.partialorder %v13_v2, 0.5  ;;  %vm27_vm2 = vcmp.ge.f32.partialorder %v13_v2, 0.75  ;;  %v15_v4 = vsub.f32 %v11_v0, %v13_v2 }
   0x4   :  { %vm20_vm3 = vcmp.ge.f32.partialorder %v14_v3, 0.25  ;;  %v21_v6 = vsel %vm19_vm0, 1.0, %v46_v5  ;;  %vm24_vm4 = vcmp.ge.f32.partialorder %v14_v3, 0.5  ;;  %v16_v7 = vsub.f32 %v12_v1, %v14_v3 }
   0x5   :  { %v22_v8 = vsel %vm20_vm3, 1.0, %v46_v5  ;;  %v25_v9 = vsel %vm23_vm1, 3.0, %v46_v5  ;;  %v26_v10 = vsel %vm24_vm4, 3.0, %v46_v5  ;;  %vm28_vm5 = vcmp.ge.f32.partialorder %v14_v3, 0.75 }
   0x6   :  { %v29_v11 = vsel %vm27_vm2, 5.0, %v46_v5  ;;  %v31_v12 = vadd.f32 %v25_v9, %v21_v6  ;;  %v30_v13 = vsel %vm28_vm5, 5.0, %v46_v5  ;;  %v32_v14 = vadd.f32 %v26_v10, %v22_v8 }
   0x7   :  { %v17_v15 = vmul.f32 %v15_v4, %v15_v4  ;;  %v18_v17 = vmul.f32 %v16_v7, %v16_v7 }
   0x8   :  { %v33_v16 = vadd.f32 %v31_v12, %v29_v11  ;;  %v34_v18 = vadd.f32 %v32_v14, %v30_v13 }
   0xa   :  { %v35_v19 = vadd.f32 1.0, %v33_v16  ;;  %v36_v20 = vadd.f32 1.0, %v34_v18 }
   0xc   :  { %v37_v21 = vmul.f32 %v35_v19, %v17_v15  ;;  %v38_v22 = vmul.f32 %v36_v20, %v18_v17 }
   0xe   :  { %v39_v23 = vadd.f32 %v38_v22, %v37_v21 }
  0x10   :  { %40 = vst [vmem:[%s79_s2] sm:$0xff] %v39_v23 }

</bundles_post_ra>
